<compile_context>
chip_gen: v5e
topology: v5e:2x2
jax: 0.10.0
libtpu: 0.0.40
codegen_flags: <defaults>
</compile_context>

<pallas_src>
import math

import jax
import jax.numpy as jnp
from jax.experimental import pallas as pl
from jax.experimental.pallas import tpu as pltpu

# ----------------------------- hyper-parameters -----------------------------
D_MODEL = 32
NHEAD = 4
DIM_FF = 64
SEQ = 8
BATCH = 2
HEAD_DIM = D_MODEL // NHEAD
LN_EPS = 1e-5

ROWS = SEQ * BATCH          # 16 : all (seq, batch) rows handled as one slab
STACK = NHEAD * ROWS        # 64 : heads stacked along the sublane axis
NEG_INF = -1e30

# ------------------------- packed-slab row offsets --------------------------
# bf16 weight slab (lane width = DIM_FF = 64; narrower blocks zero-padded)
W_LANES = DIM_FF
W_A_OFF = 0                         # A_h stacked:   [0, 128)   lanes [0,32)
W_P_OFF = NHEAD * D_MODEL           # P_h stacked:   [128, 256) lanes [0,32)
W_W1_OFF = 2 * NHEAD * D_MODEL      # linear1 W^T:   [256, 288) lanes [0,64)
W_W2_OFF = W_W1_OFF + D_MODEL       # linear2 W^T:   [288, 352) lanes [0,32)
W_B1_OFF = W_W2_OFF + DIM_FF        # linear1 bias:  [352, 368) (row-broadcast)
W_SLAB_ROWS = W_B1_OFF + ROWS       # 368 (multiple of 16 -> bf16 tile aligned)

# f32 vector slab (lane width = D_MODEL = 32), every entry pre-broadcast so the
# kernel never needs a sublane broadcast.
V_D_OFF = 0                         # d_h expanded:  [0, 64)
V_BO_OFF = STACK                    # out bias:      [64, 80)
V_LN1G_OFF = V_BO_OFF + ROWS        # norm1 gamma:   [80, 96)
V_LN1B_OFF = V_LN1G_OFF + ROWS      # norm1 beta:    [96, 112)
V_B2_OFF = V_LN1B_OFF + ROWS        # linear2 bias:  [112, 128)
V_LN2G_OFF = V_B2_OFF + ROWS        # norm2 gamma:   [128, 144)
V_LN2B_OFF = V_LN2G_OFF + ROWS      # norm2 beta:    [144, 160)
V_SLAB_ROWS = V_LN2B_OFF + ROWS


def _layer_norm(x, gamma, beta):
  # x/gamma/beta: (ROWS, D) f32 (gamma/beta pre-broadcast); biased variance
  # like torch.nn.LayerNorm.
  mean = jnp.mean(x, axis=-1, keepdims=True)
  var = jnp.mean((x - mean) ** 2, axis=-1, keepdims=True)
  return (x - mean) * jax.lax.rsqrt(var + LN_EPS) * gamma + beta


def _pairwise_sum(terms):
  # Shallow tree accumulation (breaks the serialized MRF pop->add chain).
  terms = list(terms)
  while len(terms) > 1:
    nxt = [terms[i] + terms[i + 1] for i in range(0, len(terms) - 1, 2)]
    if len(terms) % 2:
      nxt.append(terms[-1])
    terms = nxt
  return terms[0]


def _encoder_layer_kernel(x_ref, pos_ref, w_ref, v_ref, out_ref):
  x = x_ref[...]                               # (ROWS, D) f32, rows = (seq, batch)
  u = x + pos_ref[...]                         # pos embed feeds Q/K only
  x_bf = x.astype(jnp.bfloat16)
  u_bf = u.astype(jnp.bfloat16)

  # ---- per-head composed projections (static, sublane-aligned ref views) ----
  s_parts, vwo_parts = [], []
  for h in range(NHEAD):
    a_h = w_ref[W_A_OFF + h * D_MODEL:W_A_OFF + (h + 1) * D_MODEL, 0:D_MODEL]
    p_h = w_ref[W_P_OFF + h * D_MODEL:W_P_OFF + (h + 1) * D_MODEL, 0:D_MODEL]
    s_parts.append(jnp.dot(u_bf, a_h, preferred_element_type=jnp.float32))
    vwo_parts.append(jnp.dot(x_bf, p_h, preferred_element_type=jnp.float32))
  # Heads stacked along the sublane axis (free at multiples of 8/16 rows).
  s = jnp.concatenate(s_parts, axis=0) + v_ref[V_D_OFF:V_D_OFF + STACK, :]  # (64,32)
  vwo = jnp.concatenate(vwo_parts, axis=0)                                  # (64,32)

  # ---- one score matmul: every (head, query) row vs all 16 key rows --------
  scores = jax.lax.dot_general(
      s.astype(jnp.bfloat16), u_bf, (((1,), (1,)), ((), ())),
      preferred_element_type=jnp.float32)                                   # (64,16)

  # Batch-parity mask built in-kernel (no DMA'd bias tensor); f32 path.
  rid = jax.lax.broadcasted_iota(jnp.int32, (STACK, ROWS), 0)
  cid = jax.lax.broadcasted_iota(jnp.int32, (STACK, ROWS), 1)
  valid = (rid % BATCH) == (cid % BATCH)
  scores = jnp.where(valid, scores, NEG_INF)

  # ---- softmax (f32: EUP exp + approximate reciprocal) ---------------------
  scores = scores - jnp.max(scores, axis=-1, keepdims=True)
  e = jnp.exp(scores)
  attn = e * pl.reciprocal(jnp.sum(e, axis=-1, keepdims=True), approx=True)
  attn_bf = attn.astype(jnp.bfloat16)
  vwo_bf = vwo.astype(jnp.bfloat16)

  # ---- attn_out = sum_h attn_h @ (x @ Wv_h Wo_h), sublane-aligned views ----
  parts = [
      jnp.dot(attn_bf[h * ROWS:(h + 1) * ROWS, :],
              vwo_bf[h * ROWS:(h + 1) * ROWS, :],
              preferred_element_type=jnp.float32)
      for h in range(NHEAD)
  ]
  attn_out = _pairwise_sum(parts) + v_ref[V_BO_OFF:V_BO_OFF + ROWS, :]      # (16,32)

  # ---- residual + LayerNorm 1   (dropout1 == identity in eval mode) --------
  y = _layer_norm(x + attn_out,
                  v_ref[V_LN1G_OFF:V_LN1G_OFF + ROWS, :],
                  v_ref[V_LN1B_OFF:V_LN1B_OFF + ROWS, :])

  # ---- feed-forward: linear1 -> ReLU -> linear2   (dropout == identity) ----
  w1 = w_ref[W_W1_OFF:W_W1_OFF + D_MODEL, :]               # (32, 64) bf16
  w2 = w_ref[W_W2_OFF:W_W2_OFF + DIM_FF, 0:D_MODEL]        # (64, 32) bf16
  b1 = w_ref[W_B1_OFF:W_B1_OFF + ROWS, :]                  # (16, 64) bf16
  h1 = jnp.dot(y.astype(jnp.bfloat16), w1,
               preferred_element_type=jnp.float32) + b1.astype(jnp.float32)
  h1 = jnp.maximum(h1, 0.0)
  h2 = jnp.dot(h1.astype(jnp.bfloat16), w2,
               preferred_element_type=jnp.float32) + v_ref[V_B2_OFF:V_B2_OFF + ROWS, :]

  # ---- residual + LayerNorm 2   (dropout2 == identity) ---------------------
  out = _layer_norm(y + h2,
                    v_ref[V_LN2G_OFF:V_LN2G_OFF + ROWS, :],
                    v_ref[V_LN2B_OFF:V_LN2B_OFF + ROWS, :])
  out_ref[...] = out.astype(out_ref.dtype)


def prepare_params(params):
  """One-time host-side parameter preparation (hoisted out of the call path).

  Returns:
    w_slab: bf16 (W_SLAB_ROWS, 64) packed matmul weights (composed per-head).
    v_slab: f32  (V_SLAB_ROWS, 32) packed, row-broadcast biases / LN params.
  """
  D, H, HD, F = D_MODEL, NHEAD, HEAD_DIM, DIM_FF
  scale = 1.0 / math.sqrt(HD)

  wqkv = params['in_proj_w'].astype(jnp.float32)            # (3D, D)
  bqkv = params['in_proj_b'].reshape(3 * D).astype(jnp.float32)
  wq, wk, wv = wqkv[:D], wqkv[D:2 * D], wqkv[2 * D:]
  bq, bv = bqkv[:D], bqkv[2 * D:]
  wo = params['out_proj_w'].astype(jnp.float32)              # (D, D)
  bo = params['out_proj_b'].reshape(D).astype(jnp.float32)

  wq_h = wq.reshape(H, HD, D)
  wk_h = wk.reshape(H, HD, D)
  wv_h = wv.reshape(H, HD, D)
  woT_h = wo.T.reshape(H, HD, D)     # rows h*HD:(h+1)*HD of Wo^T

  # Composition done in f32 (per the correctness note in the review).
  # A_h = scale * Wq_h^T Wk_h (bilinear score form); per-query-constant bias
  # terms are dropped (softmax invariant).
  A = scale * jnp.einsum('hkd,hke->hde', wq_h, wk_h).reshape(H * D, D)
  # P_h = Wv_h^T (Wo[:, h*HD:(h+1)*HD])^T  (value proj composed with out proj)
  P = jnp.einsum('hkd,hke->hde', wv_h, woT_h).reshape(H * D, D)
  # d_h = scale * bq_h Wk_h  (per-key bias coming from the query bias)
  d = scale * jnp.einsum('hk,hkd->hd', bq.reshape(H, HD), wk_h)      # (H, D)
  d_exp = jnp.repeat(d, ROWS, axis=0)                                # (STACK, D)

  # attn rows sum to 1 -> the value bias folds into a single output bias.
  bo_total = bo + bv @ wo.T

  w1 = params['lin1_w'].T            # (D, F)
  w2 = params['lin2_w'].T            # (F, D)
  b1 = params['lin1_b'].reshape(F)
  b2 = params['lin2_b'].reshape(D)

  def padlane(a):
    return jnp.pad(a, ((0, 0), (0, W_LANES - a.shape[1])))

  w_slab = jnp.concatenate([
      padlane(A),                                    # [W_A_OFF,  +H*D)
      padlane(P),                                    # [W_P_OFF,  +H*D)
      w1,                                            # [W_W1_OFF, +D)
      padlane(w2),                                   # [W_W2_OFF, +F)
      jnp.broadcast_to(b1[None, :], (ROWS, F)),      # [W_B1_OFF, +ROWS)
  ], axis=0).astype(jnp.bfloat16)
  assert w_slab.shape == (W_SLAB_ROWS, W_LANES)

  def exp_rows(v):
    return jnp.broadcast_to(v.reshape(1, D), (ROWS, D))

  v_slab = jnp.concatenate([
      d_exp,                                         # [V_D_OFF,    +STACK)
      exp_rows(bo_total),                            # [V_BO_OFF,   +ROWS)
      exp_rows(params['ln1_g'].reshape(D)),          # [V_LN1G_OFF, +ROWS)
      exp_rows(params['ln1_b'].reshape(D)),          # [V_LN1B_OFF, +ROWS)
      exp_rows(b2),                                  # [V_B2_OFF,   +ROWS)
      exp_rows(params['ln2_g'].reshape(D)),          # [V_LN2G_OFF, +ROWS)
      exp_rows(params['ln2_b'].reshape(D)),          # [V_LN2B_OFF, +ROWS)
  ], axis=0).astype(jnp.float32)
  assert v_slab.shape == (V_SLAB_ROWS, D)

  return w_slab, v_slab


@jax.jit
def transformer_encoder_layer(src_sbd, pos_sbd, w_slab, v_slab):
  """src_sbd / pos_sbd: (S, B, D) f32, PyTorch MHA layout. Returns (S, B, D)."""
  S, B, D = src_sbd.shape
  rows = S * B
  # (S, B, D) -> (S*B, D): contiguous reshape, free (no transpose, no copy).
  # Row ordering is seq-major / batch-minor (row r -> batch = r % B), which the
  # in-kernel batch-parity mask relies on.
  x = src_sbd.reshape(rows, D)
  p = pos_sbd.reshape(rows, D)

  out = pl.pallas_call(
      _encoder_layer_kernel,
      out_shape=jax.ShapeDtypeStruct((rows, D), jnp.float32),
      in_specs=[pl.BlockSpec(memory_space=pltpu.MemorySpace.VMEM)] * 4,
      out_specs=pl.BlockSpec(memory_space=pltpu.MemorySpace.VMEM),
  )(x, p, w_slab, v_slab)

  return out.reshape(S, B, D)


# -------------------------- pure-JAX reference (check) ----------------------
def _reference(src_sbd, pos_sbd, params):
  src = jnp.transpose(src_sbd, (1, 0, 2))   # (B, S, D)
  pos = jnp.transpose(pos_sbd, (1, 0, 2))

  def ln(x, g, b):
    m = jnp.mean(x, axis=-1, keepdims=True)
    v = jnp.mean((x - m) ** 2, axis=-1, keepdims=True)
    return (x - m) * jax.lax.rsqrt(v + LN_EPS) * g + b

  qk_in = src + pos
  wqkv, bqkv = params['in_proj_w'], params['in_proj_b'][0]
  wq, wk, wv = jnp.split(wqkv, 3, axis=0)
  bq, bk, bv = jnp.split(bqkv, 3, axis=0)
  q = qk_in @ wq.T + bq
  k = qk_in @ wk.T + bk
  v = src @ wv.T + bv
  B, S, D = q.shape
  qh = q.reshape(B, S, NHEAD, HEAD_DIM).transpose(0, 2, 1, 3) / math.sqrt(HEAD_DIM)
  kh = k.reshape(B, S, NHEAD, HEAD_DIM).transpose(0, 2, 1, 3)
  vh = v.reshape(B, S, NHEAD, HEAD_DIM).transpose(0, 2, 1, 3)
  scores = jnp.einsum('bhqd,bhkd->bhqk', qh, kh)
  attn = jax.nn.softmax(scores, axis=-1)
  ctx = jnp.einsum('bhqk,bhkd->bhqd', attn, vh).transpose(0, 2, 1, 3).reshape(B, S, D)
  attn_out = ctx @ params['out_proj_w'].T + params['out_proj_b'][0]
  y = ln(src + attn_out, params['ln1_g'][0], params['ln1_b'][0])
  h1 = jnp.maximum(y @ params['lin1_w'].T + params['lin1_b'][0], 0.0)
  h2 = h1 @ params['lin2_w'].T + params['lin2_b'][0]
  out = ln(y + h2, params['ln2_g'][0], params['ln2_b'][0])
  return out.transpose(1, 0, 2)


def _init_params(key):
  ks = jax.random.split(key, 8)
  scale = 0.1
  return {
      'in_proj_w': scale * jax.random.normal(ks[0], (3 * D_MODEL, D_MODEL), jnp.float32),
      'in_proj_b': scale * jax.random.normal(ks[1], (1, 3 * D_MODEL), jnp.float32),
      'out_proj_w': scale * jax.random.normal(ks[2], (D_MODEL, D_MODEL), jnp.float32),
      'out_proj_b': scale * jax.random.normal(ks[3], (1, D_MODEL), jnp.float32),
      'ln1_g': jnp.ones((1, D_MODEL), jnp.float32),
      'ln1_b': jnp.zeros((1, D_MODEL), jnp.float32),
      'lin1_w': scale * jax.random.normal(ks[4], (DIM_FF, D_MODEL), jnp.float32),
      'lin1_b': scale * jax.random.normal(ks[5], (1, DIM_FF), jnp.float32),
      'lin2_w': scale * jax.random.normal(ks[6], (D_MODEL, DIM_FF), jnp.float32),
      'lin2_b': scale * jax.random.normal(ks[7], (1, D_MODEL), jnp.float32),
      'ln2_g': jnp.ones((1, D_MODEL), jnp.float32),
      'ln2_b': jnp.zeros((1, D_MODEL), jnp.float32),
  }


if __name__ == "__main__":
  key = jax.random.PRNGKey(0)
  k_src, k_pos, k_par = jax.random.split(key, 3)

  src = jax.random.normal(k_src, (SEQ, BATCH, D_MODEL), jnp.float32)
  pos = jax.random.normal(k_pos, (SEQ, BATCH, D_MODEL), jnp.float32)
  params = _init_params(k_par)

  # One-time parameter prep (packing / composition) — outside the call path.
  w_slab, v_slab = prepare_params(params)

  out = jax.block_until_ready(transformer_encoder_layer(src, pos, w_slab, v_slab))
  ref = jax.block_until_ready(_reference(src, pos, params))

  assert out.shape == (SEQ, BATCH, D_MODEL)
  # Tolerance reflects bf16 MXU operands + host-side weight composition + the
  # EUP approximate reciprocal; f32 reference, output is post-LayerNorm (~N(0,1)).
  assert jnp.allclose(out, ref, atol=2e-2, rtol=2e-2), "Pallas output mismatch"

  print("KERNEL_OK")
</pallas_src>

<mosaic_0001>
module attributes {stable_mosaic.version = 11 : i64} {
  func.func @_encoder_layer_kernel(%arg0: memref<16x32xf32, #tpu.memory_space<vmem>>, %arg1: memref<16x32xf32, #tpu.memory_space<vmem>>, %arg2: memref<368x64xbf16, #tpu.memory_space<vmem>>, %arg3: memref<160x32xf32, #tpu.memory_space<vmem>>, %arg4: memref<16x32xf32, #tpu.memory_space<vmem>>) attributes {dimension_semantics = [], scalar_prefetch = 0 : i64, scratch_operands = 0 : i64, tpu.core_type = #tpu.core_type<tc>} {
    %c0 = arith.constant 0 : index
    %c0_0 = arith.constant 0 : index
    %0 = vector.load %arg0[%c0, %c0_0] : memref<16x32xf32, #tpu.memory_space<vmem>>, vector<16x32xf32>
    %c0_1 = arith.constant 0 : index
    %c0_2 = arith.constant 0 : index
    %1 = vector.load %arg1[%c0_1, %c0_2] : memref<16x32xf32, #tpu.memory_space<vmem>>, vector<16x32xf32>
    %2 = arith.addf %0, %1 : vector<16x32xf32>
    %3 = arith.truncf %0 : vector<16x32xf32> to vector<16x32xbf16>
    %4 = arith.truncf %2 : vector<16x32xf32> to vector<16x32xbf16>
    %c0_3 = arith.constant 0 : index
    %c0_4 = arith.constant 0 : index
    %5 = vector.load %arg2[%c0_3, %c0_4] : memref<368x64xbf16, #tpu.memory_space<vmem>>, vector<32x32xbf16>
    %c128 = arith.constant 128 : index
    %c0_5 = arith.constant 0 : index
    %6 = vector.load %arg2[%c128, %c0_5] : memref<368x64xbf16, #tpu.memory_space<vmem>>, vector<32x32xbf16>
    %cst = arith.constant dense<0.000000e+00> : vector<16x32xf32>
    %7 = tpu.matmul %4, %5, %cst {dimension_numbers = #tpu.dot_dimension_numbers<[1], [0], [0], [1], [0, 0, 1, 1], [], []>} : vector<16x32xbf16>, vector<32x32xbf16>, vector<16x32xf32> -> vector<16x32xf32>
    %cst_6 = arith.constant dense<0.000000e+00> : vector<16x32xf32>
    %8 = tpu.matmul %3, %6, %cst_6 {dimension_numbers = #tpu.dot_dimension_numbers<[1], [0], [0], [1], [0, 0, 1, 1], [], []>} : vector<16x32xbf16>, vector<32x32xbf16>, vector<16x32xf32> -> vector<16x32xf32>
    %c32 = arith.constant 32 : index
    %c0_7 = arith.constant 0 : index
    %9 = vector.load %arg2[%c32, %c0_7] : memref<368x64xbf16, #tpu.memory_space<vmem>>, vector<32x32xbf16>
    %c160 = arith.constant 160 : index
    %c0_8 = arith.constant 0 : index
    %10 = vector.load %arg2[%c160, %c0_8] : memref<368x64xbf16, #tpu.memory_space<vmem>>, vector<32x32xbf16>
    %cst_9 = arith.constant dense<0.000000e+00> : vector<16x32xf32>
    %11 = tpu.matmul %4, %9, %cst_9 {dimension_numbers = #tpu.dot_dimension_numbers<[1], [0], [0], [1], [0, 0, 1, 1], [], []>} : vector<16x32xbf16>, vector<32x32xbf16>, vector<16x32xf32> -> vector<16x32xf32>
    %cst_10 = arith.constant dense<0.000000e+00> : vector<16x32xf32>
    %12 = tpu.matmul %3, %10, %cst_10 {dimension_numbers = #tpu.dot_dimension_numbers<[1], [0], [0], [1], [0, 0, 1, 1], [], []>} : vector<16x32xbf16>, vector<32x32xbf16>, vector<16x32xf32> -> vector<16x32xf32>
    %c64 = arith.constant 64 : index
    %c0_11 = arith.constant 0 : index
    %13 = vector.load %arg2[%c64, %c0_11] : memref<368x64xbf16, #tpu.memory_space<vmem>>, vector<32x32xbf16>
    %c192 = arith.constant 192 : index
    %c0_12 = arith.constant 0 : index
    %14 = vector.load %arg2[%c192, %c0_12] : memref<368x64xbf16, #tpu.memory_space<vmem>>, vector<32x32xbf16>
    %cst_13 = arith.constant dense<0.000000e+00> : vector<16x32xf32>
    %15 = tpu.matmul %4, %13, %cst_13 {dimension_numbers = #tpu.dot_dimension_numbers<[1], [0], [0], [1], [0, 0, 1, 1], [], []>} : vector<16x32xbf16>, vector<32x32xbf16>, vector<16x32xf32> -> vector<16x32xf32>
    %cst_14 = arith.constant dense<0.000000e+00> : vector<16x32xf32>
    %16 = tpu.matmul %3, %14, %cst_14 {dimension_numbers = #tpu.dot_dimension_numbers<[1], [0], [0], [1], [0, 0, 1, 1], [], []>} : vector<16x32xbf16>, vector<32x32xbf16>, vector<16x32xf32> -> vector<16x32xf32>
    %c96 = arith.constant 96 : index
    %c0_15 = arith.constant 0 : index
    %17 = vector.load %arg2[%c96, %c0_15] : memref<368x64xbf16, #tpu.memory_space<vmem>>, vector<32x32xbf16>
    %c224 = arith.constant 224 : index
    %c0_16 = arith.constant 0 : index
    %18 = vector.load %arg2[%c224, %c0_16] : memref<368x64xbf16, #tpu.memory_space<vmem>>, vector<32x32xbf16>
    %cst_17 = arith.constant dense<0.000000e+00> : vector<16x32xf32>
    %19 = tpu.matmul %4, %17, %cst_17 {dimension_numbers = #tpu.dot_dimension_numbers<[1], [0], [0], [1], [0, 0, 1, 1], [], []>} : vector<16x32xbf16>, vector<32x32xbf16>, vector<16x32xf32> -> vector<16x32xf32>
    %cst_18 = arith.constant dense<0.000000e+00> : vector<16x32xf32>
    %20 = tpu.matmul %3, %18, %cst_18 {dimension_numbers = #tpu.dot_dimension_numbers<[1], [0], [0], [1], [0, 0, 1, 1], [], []>} : vector<16x32xbf16>, vector<32x32xbf16>, vector<16x32xf32> -> vector<16x32xf32>
    %21 = tpu.concatenate %7, %11, %15, %19 in 0 : vector<16x32xf32>, vector<16x32xf32>, vector<16x32xf32>, vector<16x32xf32> -> vector<64x32xf32>
    %c0_19 = arith.constant 0 : index
    %c0_20 = arith.constant 0 : index
    %22 = vector.load %arg3[%c0_19, %c0_20] : memref<160x32xf32, #tpu.memory_space<vmem>>, vector<64x32xf32>
    %23 = arith.addf %21, %22 : vector<64x32xf32>
    %24 = tpu.concatenate %8, %12, %16, %20 in 0 : vector<16x32xf32>, vector<16x32xf32>, vector<16x32xf32>, vector<16x32xf32> -> vector<64x32xf32>
    %25 = arith.truncf %23 : vector<64x32xf32> to vector<64x32xbf16>
    %cst_21 = arith.constant dense<0.000000e+00> : vector<64x16xf32>
    %26 = tpu.matmul %25, %4, %cst_21 {dimension_numbers = #tpu.dot_dimension_numbers<[1], [1], [0], [0], [0, 0, 1, 0], [], []>} : vector<64x32xbf16>, vector<16x32xbf16>, vector<64x16xf32> -> vector<64x16xf32>
    %27 = tpu.iota {dimensions = array<i32: 0>} : vector<64x16xi32>
    %28 = tpu.iota {dimensions = array<i32: 1>} : vector<64x16xi32>
    %c2_i32 = arith.constant 2 : i32
    %c0_i32 = arith.constant 0 : i32
    %29 = arith.cmpi eq, %c2_i32, %c0_i32 : i32
    %c1_i32 = arith.constant 1 : i32
    %30 = arith.select %29, %c1_i32, %c2_i32 : i32
    %31 = vector.broadcast %30 : i32 to vector<64x16xi32>
    %32 = arith.remsi %27, %31 : vector<64x16xi32>
    %c0_i32_22 = arith.constant 0 : i32
    %33 = vector.broadcast %c0_i32_22 : i32 to vector<64x16xi32>
    %34 = arith.cmpi ne, %32, %33 : vector<64x16xi32>
    %c0_i32_23 = arith.constant 0 : i32
    %35 = vector.broadcast %c0_i32_23 : i32 to vector<64x16xi32>
    %36 = arith.cmpi slt, %32, %35 : vector<64x16xi32>
    %c0_i32_24 = arith.constant 0 : i32
    %37 = arith.cmpi slt, %30, %c0_i32_24 : i32
    %38 = vector.broadcast %37 : i1 to vector<64x16xi1>
    %39 = vector.broadcast %38 : vector<64x16xi1> to vector<64x16xi1>
    %40 = arith.xori %36, %39 : vector<64x16xi1>
    %41 = arith.andi %40, %34 : vector<64x16xi1>
    %42 = vector.broadcast %30 : i32 to vector<64x16xi32>
    %43 = arith.addi %32, %42 : vector<64x16xi32>
    %44 = arith.select %41, %43, %32 : vector<64x16xi1>, vector<64x16xi32>
    %c2_i32_25 = arith.constant 2 : i32
    %c0_i32_26 = arith.constant 0 : i32
    %45 = arith.cmpi eq, %c2_i32_25, %c0_i32_26 : i32
    %c1_i32_27 = arith.constant 1 : i32
    %46 = arith.select %45, %c1_i32_27, %c2_i32_25 : i32
    %47 = vector.broadcast %46 : i32 to vector<64x16xi32>
    %48 = arith.remsi %28, %47 : vector<64x16xi32>
    %c0_i32_28 = arith.constant 0 : i32
    %49 = vector.broadcast %c0_i32_28 : i32 to vector<64x16xi32>
    %50 = arith.cmpi ne, %48, %49 : vector<64x16xi32>
    %c0_i32_29 = arith.constant 0 : i32
    %51 = vector.broadcast %c0_i32_29 : i32 to vector<64x16xi32>
    %52 = arith.cmpi slt, %48, %51 : vector<64x16xi32>
    %c0_i32_30 = arith.constant 0 : i32
    %53 = arith.cmpi slt, %46, %c0_i32_30 : i32
    %54 = vector.broadcast %53 : i1 to vector<64x16xi1>
    %55 = vector.broadcast %54 : vector<64x16xi1> to vector<64x16xi1>
    %56 = arith.xori %52, %55 : vector<64x16xi1>
    %57 = arith.andi %56, %50 : vector<64x16xi1>
    %58 = vector.broadcast %46 : i32 to vector<64x16xi32>
    %59 = arith.addi %48, %58 : vector<64x16xi32>
    %60 = arith.select %57, %59, %48 : vector<64x16xi1>, vector<64x16xi32>
    %61 = arith.cmpi eq, %44, %60 : vector<64x16xi32>
    %cst_31 = arith.constant -1.000000e+30 : f32
    %62 = vector.broadcast %cst_31 : f32 to vector<64x16xf32>
    %63 = arith.select %61, %26, %62 : vector<64x16xi1>, vector<64x16xf32>
    %cst_32 = arith.constant dense<0xFF800000> : vector<64xf32>
    %64 = vector.multi_reduction <maximumf>, %63, %cst_32 [1] : vector<64x16xf32> to vector<64xf32>
    %65 = vector.shape_cast %64 : vector<64xf32> to vector<64x1xf32>
    %66 = vector.broadcast %65 : vector<64x1xf32> to vector<64x16xf32>
    %67 = arith.subf %63, %66 : vector<64x16xf32>
    %68 = math.exp %67 : vector<64x16xf32>
    %cst_33 = arith.constant dense<0.000000e+00> : vector<64xf32>
    %69 = vector.multi_reduction <add>, %68, %cst_33 [1] : vector<64x16xf32> to vector<64xf32>
    %70 = vector.shape_cast %69 : vector<64xf32> to vector<64x1xf32>
    %71 = tpu.reciprocal %70 {approx = true} : vector<64x1xf32> -> vector<64x1xf32>
    %72 = vector.broadcast %71 : vector<64x1xf32> to vector<64x16xf32>
    %73 = arith.mulf %68, %72 : vector<64x16xf32>
    %74 = arith.truncf %73 : vector<64x16xf32> to vector<64x16xbf16>
    %75 = arith.truncf %24 : vector<64x32xf32> to vector<64x32xbf16>
    %76 = vector.extract_strided_slice %74 {offsets = [0, 0], sizes = [16, 16], strides = [1, 1]} : vector<64x16xbf16> to vector<16x16xbf16>
    %77 = vector.extract_strided_slice %75 {offsets = [0, 0], sizes = [16, 32], strides = [1, 1]} : vector<64x32xbf16> to vector<16x32xbf16>
    %cst_34 = arith.constant dense<0.000000e+00> : vector<16x32xf32>
    %78 = tpu.matmul %76, %77, %cst_34 {dimension_numbers = #tpu.dot_dimension_numbers<[1], [0], [0], [1], [0, 0, 1, 1], [], []>} : vector<16x16xbf16>, vector<16x32xbf16>, vector<16x32xf32> -> vector<16x32xf32>
    %79 = vector.extract_strided_slice %74 {offsets = [16, 0], sizes = [16, 16], strides = [1, 1]} : vector<64x16xbf16> to vector<16x16xbf16>
    %80 = vector.extract_strided_slice %75 {offsets = [16, 0], sizes = [16, 32], strides = [1, 1]} : vector<64x32xbf16> to vector<16x32xbf16>
    %cst_35 = arith.constant dense<0.000000e+00> : vector<16x32xf32>
    %81 = tpu.matmul %79, %80, %cst_35 {dimension_numbers = #tpu.dot_dimension_numbers<[1], [0], [0], [1], [0, 0, 1, 1], [], []>} : vector<16x16xbf16>, vector<16x32xbf16>, vector<16x32xf32> -> vector<16x32xf32>
    %82 = vector.extract_strided_slice %74 {offsets = [32, 0], sizes = [16, 16], strides = [1, 1]} : vector<64x16xbf16> to vector<16x16xbf16>
    %83 = vector.extract_strided_slice %75 {offsets = [32, 0], sizes = [16, 32], strides = [1, 1]} : vector<64x32xbf16> to vector<16x32xbf16>
    %cst_36 = arith.constant dense<0.000000e+00> : vector<16x32xf32>
    %84 = tpu.matmul %82, %83, %cst_36 {dimension_numbers = #tpu.dot_dimension_numbers<[1], [0], [0], [1], [0, 0, 1, 1], [], []>} : vector<16x16xbf16>, vector<16x32xbf16>, vector<16x32xf32> -> vector<16x32xf32>
    %85 = vector.extract_strided_slice %74 {offsets = [48, 0], sizes = [16, 16], strides = [1, 1]} : vector<64x16xbf16> to vector<16x16xbf16>
    %86 = vector.extract_strided_slice %75 {offsets = [48, 0], sizes = [16, 32], strides = [1, 1]} : vector<64x32xbf16> to vector<16x32xbf16>
    %cst_37 = arith.constant dense<0.000000e+00> : vector<16x32xf32>
    %87 = tpu.matmul %85, %86, %cst_37 {dimension_numbers = #tpu.dot_dimension_numbers<[1], [0], [0], [1], [0, 0, 1, 1], [], []>} : vector<16x16xbf16>, vector<16x32xbf16>, vector<16x32xf32> -> vector<16x32xf32>
    %88 = arith.addf %78, %81 : vector<16x32xf32>
    %89 = arith.addf %84, %87 : vector<16x32xf32>
    %90 = arith.addf %88, %89 : vector<16x32xf32>
    %c64_38 = arith.constant 64 : index
    %c0_39 = arith.constant 0 : index
    %91 = vector.load %arg3[%c64_38, %c0_39] : memref<160x32xf32, #tpu.memory_space<vmem>>, vector<16x32xf32>
    %92 = arith.addf %90, %91 : vector<16x32xf32>
    %93 = arith.addf %0, %92 : vector<16x32xf32>
    %c80 = arith.constant 80 : index
    %c0_40 = arith.constant 0 : index
    %94 = vector.load %arg3[%c80, %c0_40] : memref<160x32xf32, #tpu.memory_space<vmem>>, vector<16x32xf32>
    %c96_41 = arith.constant 96 : index
    %c0_42 = arith.constant 0 : index
    %95 = vector.load %arg3[%c96_41, %c0_42] : memref<160x32xf32, #tpu.memory_space<vmem>>, vector<16x32xf32>
    %cst_43 = arith.constant dense<0.000000e+00> : vector<16xf32>
    %96 = vector.multi_reduction <add>, %93, %cst_43 [1] : vector<16x32xf32> to vector<16xf32>
    %97 = vector.shape_cast %96 : vector<16xf32> to vector<16x1xf32>
    %cst_44 = arith.constant 3.200000e+01 : f32
    %98 = vector.broadcast %cst_44 : f32 to vector<16x1xf32>
    %99 = arith.divf %97, %98 : vector<16x1xf32>
    %100 = vector.broadcast %99 : vector<16x1xf32> to vector<16x32xf32>
    %101 = arith.subf %93, %100 : vector<16x32xf32>
    %102 = arith.mulf %101, %101 : vector<16x32xf32>
    %cst_45 = arith.constant dense<0.000000e+00> : vector<16xf32>
    %103 = vector.multi_reduction <add>, %102, %cst_45 [1] : vector<16x32xf32> to vector<16xf32>
    %104 = vector.shape_cast %103 : vector<16xf32> to vector<16x1xf32>
    %cst_46 = arith.constant 3.200000e+01 : f32
    %105 = vector.broadcast %cst_46 : f32 to vector<16x1xf32>
    %106 = arith.divf %104, %105 : vector<16x1xf32>
    %107 = vector.broadcast %99 : vector<16x1xf32> to vector<16x32xf32>
    %108 = arith.subf %93, %107 : vector<16x32xf32>
    %cst_47 = arith.constant 9.99999974E-6 : f32
    %109 = vector.broadcast %cst_47 : f32 to vector<16x1xf32>
    %110 = arith.addf %106, %109 : vector<16x1xf32>
    %111 = math.rsqrt %110 : vector<16x1xf32>
    %112 = vector.broadcast %111 : vector<16x1xf32> to vector<16x32xf32>
    %113 = arith.mulf %108, %112 : vector<16x32xf32>
    %114 = arith.mulf %113, %94 : vector<16x32xf32>
    %115 = arith.addf %114, %95 : vector<16x32xf32>
    %c256 = arith.constant 256 : index
    %c0_48 = arith.constant 0 : index
    %116 = vector.load %arg2[%c256, %c0_48] : memref<368x64xbf16, #tpu.memory_space<vmem>>, vector<32x64xbf16>
    %c288 = arith.constant 288 : index
    %c0_49 = arith.constant 0 : index
    %117 = vector.load %arg2[%c288, %c0_49] : memref<368x64xbf16, #tpu.memory_space<vmem>>, vector<64x32xbf16>
    %c352 = arith.constant 352 : index
    %c0_50 = arith.constant 0 : index
    %118 = vector.load %arg2[%c352, %c0_50] : memref<368x64xbf16, #tpu.memory_space<vmem>>, vector<16x64xbf16>
    %119 = arith.truncf %115 : vector<16x32xf32> to vector<16x32xbf16>
    %cst_51 = arith.constant dense<0.000000e+00> : vector<16x64xf32>
    %120 = tpu.matmul %119, %116, %cst_51 {dimension_numbers = #tpu.dot_dimension_numbers<[1], [0], [0], [1], [0, 0, 1, 1], [], []>} : vector<16x32xbf16>, vector<32x64xbf16>, vector<16x64xf32> -> vector<16x64xf32>
    %121 = arith.extf %118 : vector<16x64xbf16> to vector<16x64xf32>
    %122 = arith.addf %120, %121 : vector<16x64xf32>
    %cst_52 = arith.constant 0.000000e+00 : f32
    %123 = vector.broadcast %cst_52 : f32 to vector<16x64xf32>
    %124 = arith.maximumf %122, %123 : vector<16x64xf32>
    %125 = arith.truncf %124 : vector<16x64xf32> to vector<16x64xbf16>
    %cst_53 = arith.constant dense<0.000000e+00> : vector<16x32xf32>
    %126 = tpu.matmul %125, %117, %cst_53 {dimension_numbers = #tpu.dot_dimension_numbers<[1], [0], [0], [1], [0, 0, 1, 1], [], []>} : vector<16x64xbf16>, vector<64x32xbf16>, vector<16x32xf32> -> vector<16x32xf32>
    %c112 = arith.constant 112 : index
    %c0_54 = arith.constant 0 : index
    %127 = vector.load %arg3[%c112, %c0_54] : memref<160x32xf32, #tpu.memory_space<vmem>>, vector<16x32xf32>
    %128 = arith.addf %126, %127 : vector<16x32xf32>
    %129 = arith.addf %115, %128 : vector<16x32xf32>
    %c128_55 = arith.constant 128 : index
    %c0_56 = arith.constant 0 : index
    %130 = vector.load %arg3[%c128_55, %c0_56] : memref<160x32xf32, #tpu.memory_space<vmem>>, vector<16x32xf32>
    %c144 = arith.constant 144 : index
    %c0_57 = arith.constant 0 : index
    %131 = vector.load %arg3[%c144, %c0_57] : memref<160x32xf32, #tpu.memory_space<vmem>>, vector<16x32xf32>
    %cst_58 = arith.constant dense<0.000000e+00> : vector<16xf32>
    %132 = vector.multi_reduction <add>, %129, %cst_58 [1] : vector<16x32xf32> to vector<16xf32>
    %133 = vector.shape_cast %132 : vector<16xf32> to vector<16x1xf32>
    %cst_59 = arith.constant 3.200000e+01 : f32
    %134 = vector.broadcast %cst_59 : f32 to vector<16x1xf32>
    %135 = arith.divf %133, %134 : vector<16x1xf32>
    %136 = vector.broadcast %135 : vector<16x1xf32> to vector<16x32xf32>
    %137 = arith.subf %129, %136 : vector<16x32xf32>
    %138 = arith.mulf %137, %137 : vector<16x32xf32>
    %cst_60 = arith.constant dense<0.000000e+00> : vector<16xf32>
    %139 = vector.multi_reduction <add>, %138, %cst_60 [1] : vector<16x32xf32> to vector<16xf32>
    %140 = vector.shape_cast %139 : vector<16xf32> to vector<16x1xf32>
    %cst_61 = arith.constant 3.200000e+01 : f32
    %141 = vector.broadcast %cst_61 : f32 to vector<16x1xf32>
    %142 = arith.divf %140, %141 : vector<16x1xf32>
    %143 = vector.broadcast %135 : vector<16x1xf32> to vector<16x32xf32>
    %144 = arith.subf %129, %143 : vector<16x32xf32>
    %cst_62 = arith.constant 9.99999974E-6 : f32
    %145 = vector.broadcast %cst_62 : f32 to vector<16x1xf32>
    %146 = arith.addf %142, %145 : vector<16x1xf32>
    %147 = math.rsqrt %146 : vector<16x1xf32>
    %148 = vector.broadcast %147 : vector<16x1xf32> to vector<16x32xf32>
    %149 = arith.mulf %144, %148 : vector<16x32xf32>
    %150 = arith.mulf %149, %130 : vector<16x32xf32>
    %151 = arith.addf %150, %131 : vector<16x32xf32>
    %c0_63 = arith.constant 0 : index
    %c0_64 = arith.constant 0 : index
    %152 = vector.load %arg4[%c0_63, %c0_64] : memref<16x32xf32, #tpu.memory_space<vmem>>, vector<16x32xf32>
    tpu.vector_store %arg4[%c0_63, %c0_64], %151 {strides = array<i32>} : memref<16x32xf32, #tpu.memory_space<vmem>>, vector<16x32xf32>,
    return
  }
}

</mosaic_0001>

<bundles_post_ra>
// kernel: transformer_encoder_layer.1
= control target key start
LH: loop header
LB: loop body
LE: loop exit
PB: predicated region body
PF: predicated region fallthrough
CT: control target
= control target key end

     0   :  { %s1427_s0 = inlined_call_operand.vmem [shape: f32[16,32], index: 0, kind: input, shape index: {}]   ;;  %s1428_s1 = inlined_call_operand.vmem [shape: f32[16,32], index: 1, kind: input, shape index: {}]   ;;  %s1429_s2 = inlined_call_operand.vmem [shape: bf16[368,64], index: 2, kind: input, shape index: {}]   ;;  %s1430_s3 = inlined_call_operand.vmem [shape: f32[160,32], index: 3, kind: input, shape index: {}]   ;;  %s1431_s4 = inlined_call_operand.hbm [shape: f32[16,32], index: 4, kind: output, shape index: {}]  }
   0x1   :  { %v1028_v0 = vld [vmem:[%s1429_s2 + $0x8] sm:$0xff]  ;;  %v1032_v1 = vld [vmem:[%s1429_s2 + $0x18] sm:$0xff]  ;;  %v1027_v2 = vld [vmem:[%s1429_s2] sm:$0xff] }
   0x2   :  { %v1031_v3 = vld [vmem:[%s1429_s2 + $0x10] sm:$0xff]  ;;  %v1170_v4 = vld [vmem:[%s1427_s0] sm:$0xff]  ;;  %v1175_v5 = vld [vmem:[%s1427_s0 + $0x8] sm:$0xff]  ;;  %57 = vmatpush.bf16.msra.mxu1 %v1028_v0  ;;  %120 = vmatpush.bf16.msra.mxu2 %v1032_v1 }
   0x3   :  { %v21_v6 = vld [vmem:[%s1428_s1] sm:$0xff]  ;;  %v22_v7 = vld [vmem:[%s1428_s1 + $0x8] sm:$0xff]  ;;  %v1040_v11 = vld [vmem:[%s1429_s2 + $0x38] sm:$0xff] }
   0x4   :  { %v1036_v8 = vld [vmem:[%s1429_s2 + $0x28] sm:$0xff]  ;;  %v23_v9 = vadd.f32 %v21_v6, %v1170_v4  ;;  %v24_v10 = vadd.f32 %v22_v7, %v1175_v5  ;;  %v1035_v12 = vld [vmem:[%s1429_s2 + $0x20] sm:$0xff] }
   0x5   :  { %180 = vmatpush.bf16.msra.mxu0 %v1036_v8 }
   0x6   :  { %9 = vsyncpa [#allocation3], 0  ;;  %v26_v13 = vpack.c.bf16 %v24_v10, %v23_v9  ;;  %58 = vmatpush.bf16.msra.mxu1 %v1027_v2  ;;  %121 = vmatpush.bf16.msra.mxu2 %v1031_v3  ;;  %vm47_vm0 = vcmask 261120   ;;  %v1039_v14 = vld [vmem:[%s1429_s2 + $0x30] sm:$0xff]  ;;  %v274_v17 = vld [vmem:[%s1430_s3] sm:$0xff]  ;;  %v335_v44 = vlaneseq  ;;  %vm470_vm2 = vcmask 130048  }
   0x7   :  { %v275_v18 = vld [vmem:[%s1430_s3 + $0x8] sm:$0xff]  ;;  %v276_v24 = vld [vmem:[%s1430_s3 + $0x10] sm:$0xff]  ;;  %v277_v26 = vld [vmem:[%s1430_s3 + $0x18] sm:$0xff]  ;;  %s1127_s22 = smov [#allocation2]   ;;  %s909_s26 = sshll.u32 %s1431_s4, 4  ;;  %s910_s26 = int_to_ptr.hbm [resolvable:$true] %s909_s26 }
   0x8   :  { %v49_v15 = vsel %vm47_vm0, %v26_v13, 0  ;;  %v278_v31 = vld [vmem:[%s1430_s3 + $0x20] sm:$0xff]  ;;  %v279_v33 = vld [vmem:[%s1430_s3 + $0x28] sm:$0xff]  ;;  %v280_v38 = vld [vmem:[%s1430_s3 + $0x30] sm:$0xff]  ;;  %v336_v45 = vshrl.u32 %v335_v44, 7  ;;  %v345_v46 = vand.u32 127, %v335_v44 }
   0x9   :  { %181 = vmatpush.bf16.msra.mxu0 %v1035_v12  ;;  %929 = vmatmul.msk.bf16.vlgmr.msra.gmra.mxu1 %vm47_vm0, %v26_v13  ;;  %v281_v40 = vld [vmem:[%s1430_s3 + $0x38] sm:$0xff]  ;;  %s907_s23 = sshll.u32 %s1127_s22, 4  ;;  %s1128_s29 = smov 128   ;;  %s908_s23 = int_to_ptr.vmem [resolvable:$true] %s907_s23 }
   0xa   :  { %240 = vmatpush.bf16.msrb.mxu2 %v1040_v11  ;;  %v350_v47 = vand.u32 1, %v336_v45  ;;  %v446_v48 = vand.u32 1, %v345_v46  ;;  %v337_v49 = vadd.s32 8, %v336_v45  ;;  %v338_v54 = vadd.s32 16, %v336_v45  ;;  %s1129_s30 = smov 8  }
   0xb   :  { %947 = vmatmul.msk.bf16.vlgmr.msra.gmra.mxu2 %vm47_vm0, %v26_v13  ;;  %v339_v59 = vadd.s32 24, %v336_v45  ;;  %v340_v0 = vadd.s32 32, %v336_v45  ;;  %v341_v7 = vadd.s32 40, %v336_v45  ;;  %v342_v12 = vadd.s32 48, %v336_v45 }
   0xc   :  { %965 = vmatmul.msk.bf16.vlgmr.msra.gmra.mxu0 %vm47_vm0, %v26_v13  ;;  %vm454_vm1 = vcmp.eq.s32.totalorder %v350_v47, %v446_v48  ;;  %v357_v53 = vand.u32 1, %v337_v49  ;;  %v364_v58 = vand.u32 1, %v338_v54 }
   0xd   :  { %313 = vmatpush.bf16.xpose.msrb.mxu0 %v49_v15  ;;  %v371_v63 = vand.u32 1, %v339_v59  ;;  %v378_v6 = vand.u32 1, %v340_v0  ;;  %v385_v11 = vand.u32 1, %v341_v7 }
   0xe   :  { %241 = vmatpush.bf16.msrb.mxu2 %v1039_v14  ;;  %vm455_vm3 = vcmp.eq.s32.totalorder %v357_v53, %v446_v48  ;;  %vm456_vm4 = vcmp.eq.s32.totalorder %v364_v58, %v446_v48 }
   0xf   :  { %vm457_vm5 = vcmp.eq.s32.totalorder %v371_v63, %v446_v48  ;;  %vm458_vm6 = vcmp.eq.s32.totalorder %v378_v6, %v446_v48  ;;  %vm459_vm7 = vcmp.eq.s32.totalorder %v385_v11, %v446_v48 }
  0x1b   :  { %983 = vmatmul.msk.bf16.vlgmr.msrb.gmra.mxu2 %vm47_vm0, %v26_v13 }
  0x86   :  { %v60_v16 = vpop.f32.mrf.mxu1 }
  0x87   :  { %v282_v20 = vadd.f32 %v274_v17, %v60_v16  ;;  %v392_v16 = vand.u32 1, %v342_v12  ;;  %v343_v17 = vadd.s32 56, %v336_v45 }
  0x89   :  { %v183_v29 = vpop.f32.mrf.mxu0  ;;  %vm460_vm8 = vcmp.eq.s32.totalorder %v392_v16, %v446_v48 }
  0x8a   :  { %v286_v34 = vadd.f32 %v278_v31, %v183_v29  ;;  %v1029_v29 = vld [vmem:[%s1429_s2 + $0x40] sm:$0xff]  ;;  %v1041_v31 = vld [vmem:[%s1429_s2 + $0x70] sm:$0xff] }
  0x8e   :  { %v62_v19 = vpop.f32.mrf.mxu1  ;;  %v123_v22 = vpop.f32.mrf.mxu2 }
  0x8f   :  { %v283_v21 = vadd.f32 %v275_v18, %v62_v19  ;;  %v284_v27 = vadd.f32 %v276_v24, %v123_v22 }
  0x91   :  { %v290_v23 = vpack.c.bf16 %v283_v21, %v282_v20  ;;  %v185_v32 = vpop.f32.mrf.mxu0  ;;  %v399_v21 = vand.u32 1, %v343_v17 }
  0x92   :  { %v287_v35 = vadd.f32 %v279_v33, %v185_v32 }
  0x93   :  { %993 = vmatmul.msk.bf16.vlgmr.msrb.gmra.mxu0 %vm47_vm0, %v290_v23  ;;  %vm461_vm9 = vcmp.eq.s32.totalorder %v399_v21, %v446_v48 }
  0x94   :  { %v292_v37 = vpack.c.bf16 %v287_v35, %v286_v34  ;;  %v1038_v35 = vld [vmem:[%s1429_s2 + $0x68] sm:$0xff] }
  0x96   :  { %v125_v25 = vpop.f32.mrf.mxu2 }
  0x97   :  { %v285_v28 = vadd.f32 %v277_v26, %v125_v25  ;;  %v1034_v25 = vld [vmem:[%s1429_s2 + $0x58] sm:$0xff]  ;;  %v1033_v26 = vld [vmem:[%s1429_s2 + $0x50] sm:$0xff] }
  0x98   :  { %146 = vmatpush.bf16.msra.mxu3 %v1034_v25 }
  0x99   :  { %v291_v30 = vpack.c.bf16 %v285_v28, %v284_v27  ;;  %v25_v27 = vpack.c.bf16 %v1175_v5, %v1170_v4  ;;  %v1030_v28 = vld [vmem:[%s1429_s2 + $0x48] sm:$0xff] }
  0x9a   :  { %86 = vmatpush.bf16.msrb.mxu1 %v1030_v28 }
  0x9c   :  { %147 = vmatpush.bf16.msra.mxu3 %v1033_v26 }
  0x9e   :  { %v243_v36 = vpop.f32.mrf.mxu2  ;;  %87 = vmatpush.bf16.msrb.mxu1 %v1029_v29 }
  0x9f   :  { %v288_v41 = vadd.f32 %v280_v38, %v243_v36  ;;  %956 = vmatmul.msk.bf16.vlgmr.msra.gmra.mxu3 %vm47_vm0, %v25_v27  ;;  %v1037_v36 = vld [vmem:[%s1429_s2 + $0x60] sm:$0xff] }
  0xa1   :  { %938 = vmatmul.msk.bf16.vlgmr.msrb.gmra.mxu1 %vm47_vm0, %v25_v27 }
  0xa2   :  { %206 = vmatpush.bf16.msra.mxu1 %v1038_v35 }
  0xa3   :  { %994 = vmatmul.msk.bf16.gmra.mxu0 %vm47_vm0, %v291_v30  ;;  %v1042_v30 = vld [vmem:[%s1429_s2 + $0x78] sm:$0xff] }
  0xa4   :  { %266 = vmatpush.bf16.msrb.mxu3 %v1042_v30 }
  0xa6   :  { %v245_v39 = vpop.f32.mrf.mxu2  ;;  %207 = vmatpush.bf16.msra.mxu1 %v1037_v36 }
  0xa7   :  { %v289_v42 = vadd.f32 %v281_v40, %v245_v39 }
  0xa8   :  { %267 = vmatpush.bf16.msrb.mxu3 %v1041_v31 }
  0xa9   :  { %v293_v43 = vpack.c.bf16 %v289_v42, %v288_v41 }
  0xaf   :  { %992 = vmatmul.msk.bf16.vlgmr.msrb.gmra.mxu3 %vm47_vm0, %v25_v27 }
  0xb1   :  { %974 = vmatmul.msk.bf16.vlgmr.msra.gmra.mxu1 %vm47_vm0, %v25_v27 }
  0xb3   :  { %995 = vmatmul.msk.bf16.gmra.mxu0 %vm47_vm0, %v292_v37 }
  0xc3   :  { %996 = vmatmul.msk.bf16.gmra.mxu0 %vm47_vm0, %v293_v43 }
 0x110   :  { %v315_v50 = vpop.f32.mrf.mxu0 }
 0x111   :  { %v1230_v51 = vsel %vm454_vm1, %v315_v50, -1e+30 }
 0x112   :  { %v471_v52 = vsel %vm470_vm2, %v1230_v51, -inf }
 0x113   :  { %472 = vmax.xlane.f32.xlu1 %v471_v52 }
 0x118   :  { %v317_v55 = vpop.f32.mrf.mxu0 }
 0x119   :  { %v1234_v56 = vsel %vm455_vm3, %v317_v55, -1e+30 }
 0x11a   :  { %v474_v57 = vsel %vm470_vm2, %v1234_v56, -inf }
 0x11b   :  { %475 = vmax.xlane.f32.xlu1 %v474_v57 }
 0x120   :  { %v320_v60 = vpop.f32.mrf.mxu0 }
 0x121   :  { %v1238_v61 = vsel %vm456_vm4, %v320_v60, -1e+30 }
 0x122   :  { %v477_v62 = vsel %vm470_vm2, %v1238_v61, -inf  ;;  %v149_v12 = vpop.f32.mrf.mxu3 }
 0x123   :  { %478 = vmax.xlane.f32.xlu0 %v477_v62 }
 0x128   :  { %v322_v1 = vpop.f32.mrf.mxu0 }
 0x129   :  { %v1242_v2 = vsel %vm457_vm5, %v322_v1, -1e+30 }
 0x12a   :  { %v480_v3 = vsel %vm470_vm2, %v1242_v2, -inf  ;;  %v151_v16 = vpop.f32.mrf.mxu3 }
 0x12b   :  { %481 = vmax.xlane.f32.xlu0 %v480_v3 }
 0x130   :  { %v325_v8 = vpop.f32.mrf.mxu0 }
 0x131   :  { %v1246_v9 = vsel %vm458_vm6, %v325_v8, -1e+30 }
 0x132   :  { %v483_v10 = vsel %vm470_vm2, %v1246_v9, -inf  ;;  %v269_v26 = vpop.f32.mrf.mxu3 }
 0x133   :  { %484 = vmax.xlane.f32.xlu0 %v483_v10  ;;  %v573_v30 = vpack.c.bf16 %v269_v26, %v269_v26 }
 0x138   :  { %v327_v13 = vpop.f32.mrf.mxu0 }
 0x139   :  { %v1250_v14 = vsel %vm459_vm7, %v327_v13, -1e+30  ;;  %v89_v13 = vpop.f32.mrf.mxu1 }
 0x13a   :  { %v486_v15 = vsel %vm470_vm2, %v1250_v14, -inf }
 0x13b   :  { %487 = vmax.xlane.f32.xlu1 %v486_v15  ;;  %v567_v15 = vpack.c.bf16 %v89_v13, %v89_v13 }
 0x140   :  { %v330_v18 = vpop.f32.mrf.mxu0 }
 0x141   :  { %v1254_v19 = vsel %vm460_vm8, %v330_v18, -1e+30  ;;  %v91_v17 = vpop.f32.mrf.mxu1 }
 0x142   :  { %v489_v20 = vsel %vm470_vm2, %v1254_v19, -inf  ;;  %v568_v21 = vpack.c.bf16 %v91_v17, %v91_v17 }
 0x143   :  { %490 = vmax.xlane.f32.xlu2 %v489_v20  ;;  %v570_v20 = vpack.c.bf16 %v151_v16, %v151_v16 }
 0x148   :  { %v332_v22 = vpop.f32.mrf.mxu0 }
 0x149   :  { %v1258_v23 = vsel %vm461_vm9, %v332_v22, -1e+30  ;;  %v583_v22 = vunpack.c.l.b16 %v570_v20  ;;  %v209_v27 = vpop.f32.mrf.mxu1 }
 0x14a   :  { %v492_v24 = vsel %vm470_vm2, %v1258_v23, -inf  ;;  %v571_v31 = vpack.c.bf16 %v209_v27, %v209_v27 }
 0x14b   :  { %493 = vmax.xlane.f32.xlu2 %v492_v24 }
 0x14c   :  { %v666_v35 = vunpack.c.l.b16 %v571_v31 }
 0x186   :  { %v473_v32 = vpop.xlane.xlu1 %472 }
 0x187   :  { %v495_v33 = vsub.f32 %v1230_v51, %v473_v32  ;;  %v271_v32 = vpop.f32.mrf.mxu3 }
 0x188   :  { %v574_v36 = vpack.c.bf16 %v271_v32, %v271_v32 }
 0x189   :  { %v503_v34 = vmul.f32 1.442695, %v495_v33  ;;  %v211_v33 = vpop.f32.mrf.mxu1 }
 0x18b   :  { %1058 = vpow2.f32 %v503_v34  ;;  %v610_v34 = vunpack.c.l.b16 %v573_v30 }
 0x18e   :  { %v476_v39 = vpop.xlane.xlu1 %475 }
 0x18f   :  { %v496_v42 = vsub.f32 %v1234_v56, %v476_v39  ;;  %v611_v39 = vunpack.c.l.b16 %v574_v36 }
 0x191   :  { %v1292_v37 = vpop.eup %1058  ;;  %v505_v44 = vmul.f32 1.442695, %v496_v42 }
 0x192   :  { %v519_v38 = vsel %vm470_vm2, %v1292_v37, 0.0 }
 0x193   :  { %520 = vadd.xlane.f32.xlu1 %v519_v38  ;;  %v572_v38 = vpack.c.bf16 %v211_v33, %v211_v33 }
 0x196   :  { %v479_v40 = vpop.xlane.xlu0 %478 }
 0x197   :  { %v497_v41 = vsub.f32 %v1238_v61, %v479_v40  ;;  %v667_v40 = vunpack.c.l.b16 %v572_v38 }
 0x199   :  { %v507_v43 = vmul.f32 1.442695, %v497_v41 }
 0x19b   :  { %1060 = vpow2.f32 %v507_v43 }
 0x19c   :  { %1062 = vpow2.f32 %v505_v44  ;;  %v612_v44 = vpack.c.b16 %v611_v39, %v610_v34 }
 0x19e   :  { %v482_v45 = vpop.xlane.xlu0 %481  ;;  %624 = vmatpush.bf16.msra.mxu2 %v612_v44 }
 0x19f   :  { %v498_v46 = vsub.f32 %v1242_v2, %v482_v45  ;;  %v668_v45 = vpack.c.b16 %v667_v40, %v666_v35  ;;  %v690_v40 = vld [vmem:[%s1430_s3 + $0x48] sm:$0xff] }
 0x1a1   :  { %v1300_v47 = vpop.eup %1060  ;;  %v509_v48 = vmul.f32 1.442695, %v498_v46 }
 0x1a2   :  { %v525_v49 = vsel %vm470_vm2, %v1300_v47, 0.0  ;;  %v1304_v51 = vpop.eup %1062 }
 0x1a3   :  { %1064 = vpow2.f32 %v509_v48  ;;  %526 = vadd.xlane.f32.xlu2 %v525_v49  ;;  %v522_v56 = vsel %vm470_vm2, %v1304_v51, 0.0 }
 0x1a6   :  { %v485_v50 = vpop.xlane.xlu0 %484 }
 0x1a7   :  { %v499_v52 = vsub.f32 %v1246_v9, %v485_v50 }
 0x1a9   :  { %v1307_v53 = vpop.eup %1064  ;;  %v511_v54 = vmul.f32 1.442695, %v499_v52 }
 0x1aa   :  { %v528_v55 = vsel %vm470_vm2, %v1307_v53, 0.0 }
 0x1ab   :  { %1066 = vpow2.f32 %v511_v54  ;;  %529 = vadd.xlane.f32.xlu0 %v528_v55  ;;  %523 = vadd.xlane.f32.xlu2 %v522_v56 }
 0x1ae   :  { %v488_v59 = vpop.xlane.xlu1 %487 }
 0x1af   :  { %v500_v62 = vsub.f32 %v1250_v14, %v488_v59  ;;  %v569_v14 = vpack.c.bf16 %v149_v12, %v149_v12 }
 0x1b1   :  { %v1313_v57 = vpop.eup %1066  ;;  %v513_v0 = vmul.f32 1.442695, %v500_v62  ;;  %v582_v18 = vunpack.c.l.b16 %v569_v14 }
 0x1b2   :  { %v531_v58 = vsel %vm470_vm2, %v1313_v57, 0.0 }
 0x1b3   :  { %532 = vadd.xlane.f32.xlu2 %v531_v58  ;;  %v584_v24 = vpack.c.b16 %v583_v22, %v582_v18 }
 0x1b5   :  { %596 = vmatpush.bf16.msrb.mxu1 %v584_v24 }
 0x1b6   :  { %v491_v60 = vpop.xlane.xlu2 %490 }
 0x1b7   :  { %v501_v61 = vsub.f32 %v1254_v19, %v491_v60  ;;  %v638_v19 = vunpack.c.l.b16 %v567_v15 }
 0x1b9   :  { %v515_v63 = vmul.f32 1.442695, %v501_v61  ;;  %680 = vmatpush.bf16.msra.mxu1 %v668_v45  ;;  %v1126_v45 = vmov 32.0  }
 0x1bb   :  { %1068 = vpow2.f32 %v515_v63 }
 0x1bc   :  { %1070 = vpow2.f32 %v513_v0 }
 0x1be   :  { %v494_v1 = vpop.xlane.xlu2 %493 }
 0x1bf   :  { %v502_v2 = vsub.f32 %v1258_v23, %v494_v1  ;;  %v639_v23 = vunpack.c.l.b16 %v568_v21 }
 0x1c1   :  { %v1320_v3 = vpop.eup %1068  ;;  %v517_v6 = vmul.f32 1.442695, %v502_v2  ;;  %v640_v25 = vpack.c.b16 %v639_v23, %v638_v19 }
 0x1c2   :  { %v537_v7 = vsel %vm470_vm2, %v1320_v3, 0.0  ;;  %v1324_v8 = vpop.eup %1070 }
 0x1c3   :  { %1072 = vpow2.f32 %v517_v6  ;;  %538 = vadd.xlane.f32.xlu0 %v537_v7  ;;  %v534_v10 = vsel %vm470_vm2, %v1324_v8, 0.0  ;;  %652 = vmatpush.bf16.msra.mxu3 %v640_v25 }
 0x1c9   :  { %v1326_v9 = vpop.eup %1072 }
 0x1ca   :  { %v540_v11 = vsel %vm470_vm2, %v1326_v9, 0.0 }
 0x1cb   :  { %535 = vadd.xlane.f32.xlu0 %v534_v10  ;;  %541 = vadd.xlane.f32.xlu1 %v540_v11 }
 0x206   :  { %v521_v29 = vpop.xlane.xlu1 %520 }
 0x216   :  { %v527_v28 = vpop.xlane.xlu2 %526 }
 0x217   :  { %1074 = vrcp.f32 %v527_v28 }
 0x218   :  { %1076 = vrcp.f32 %v521_v29 }
 0x21d   :  { %v1075_v43 = vpop.eup %1074 }
 0x21e   :  { %v530_v41 = vpop.xlane.xlu0 %529  ;;  %v524_v42 = vpop.xlane.xlu2 %523  ;;  %v553_v48 = vmul.f32 %v1075_v43, %v1300_v47 }
 0x21f   :  { %1078 = vrcp.f32 %v530_v41  ;;  %v1077_v46 = vpop.eup %1076 }
 0x220   :  { %1080 = vrcp.f32 %v524_v42  ;;  %v551_v49 = vmul.f32 %v1077_v46, %v1292_v37  ;;  %v561_v54 = vpack.c.bf16 %v553_v48, %v553_v48 }
 0x222   :  { %v559_v56 = vpack.c.bf16 %v551_v49, %v551_v49  ;;  %v577_v61 = vunpack.c.l.b16 %v561_v54 }
 0x224   :  { %v633_v63 = vunpack.c.l.b16 %v559_v56 }
 0x225   :  { %v1079_v50 = vpop.eup %1078 }
 0x226   :  { %v1081_v52 = vpop.eup %1080  ;;  %v554_v55 = vmul.f32 %v1079_v50, %v1307_v53  ;;  %v533_v37 = vpop.xlane.xlu2 %532 }
 0x227   :  { %v552_v58 = vmul.f32 %v1081_v52, %v1304_v51  ;;  %1082 = vrcp.f32 %v533_v37  ;;  %v1043_v37 = vld [vmem:[%s1429_s2 + $0x80] sm:$0xff] }
 0x228   :  { %v562_v59 = vpack.c.bf16 %v554_v55, %v554_v55 }
 0x229   :  { %v560_v60 = vpack.c.bf16 %v552_v58, %v552_v58 }
 0x22a   :  { %v578_v62 = vunpack.c.l.b16 %v562_v59 }
 0x22b   :  { %v634_v0 = vunpack.c.l.b16 %v560_v60 }
 0x22c   :  { %v579_v1 = vpack.c.b16 %v578_v62, %v577_v61 }
 0x22d   :  { %v635_v2 = vpack.c.b16 %v634_v0, %v633_v63  ;;  %v1083_v7 = vpop.eup %1082  ;;  %v1044_v0 = vld [vmem:[%s1429_s2 + $0x88] sm:$0xff] }
 0x22e   :  { %997 = vmatmul.msk.bf16.vlgmr.msrb.gmra.mxu1 %vm470_vm2, %v579_v1  ;;  %v555_v10 = vmul.f32 %v1083_v7, %v1313_v57  ;;  %792 = vmatpush.bf16.msrb.mxu2 %v1044_v0 }
 0x22f   :  { %999 = vmatmul.msk.bf16.vlgmr.msra.gmra.mxu3 %vm470_vm2, %v635_v2 }
 0x230   :  { %v563_v14 = vpack.c.bf16 %v555_v10, %v555_v10 }
 0x232   :  { %v661_v20 = vunpack.c.l.b16 %v563_v14  ;;  %793 = vmatpush.bf16.msrb.mxu2 %v1043_v37 }
 0x236   :  { %v539_v47 = vpop.xlane.xlu0 %538 }
 0x237   :  { %1084 = vrcp.f32 %v539_v47 }
 0x23d   :  { %v1085_v51 = vpop.eup %1084 }
 0x23e   :  { %v536_v53 = vpop.xlane.xlu0 %535  ;;  %v542_v6 = vpop.xlane.xlu1 %541  ;;  %v557_v11 = vmul.f32 %v1085_v51, %v1320_v3 }
 0x23f   :  { %1086 = vrcp.f32 %v536_v53  ;;  %v1048_v53 = vld [vmem:[%s1429_s2 + $0xa8] sm:$0xff] }
 0x240   :  { %1088 = vrcp.f32 %v542_v6  ;;  %v565_v16 = vpack.c.bf16 %v557_v11, %v557_v11  ;;  %837 = vmatpush.bf16.msrb.mxu3 %v1048_v53 }
 0x241   :  { %1090 = vrcp.f32 %v1126_v45  ;;  %v803_v45 = vld [vmem:[%s1430_s3 + $0x70] sm:$0xff] }
 0x242   :  { %v605_v22 = vunpack.c.l.b16 %v565_v16 }
 0x245   :  { %v1087_v12 = vpop.eup %1086 }
 0x246   :  { %v1089_v13 = vpop.eup %1088  ;;  %v556_v15 = vmul.f32 %v1087_v12, %v1324_v8 }
 0x247   :  { %v558_v17 = vmul.f32 %v1089_v13, %v1326_v9  ;;  %v689_v9 = vld [vmem:[%s1430_s3 + $0x40] sm:$0xff] }
 0x248   :  { %v564_v18 = vpack.c.bf16 %v556_v15, %v556_v15 }
 0x249   :  { %v566_v19 = vpack.c.bf16 %v558_v17, %v558_v17 }
 0x24a   :  { %v662_v21 = vunpack.c.l.b16 %v564_v18 }
 0x24b   :  { %v606_v23 = vunpack.c.l.b16 %v566_v19 }
 0x24c   :  { %v663_v24 = vpack.c.b16 %v662_v21, %v661_v20 }
 0x24d   :  { %v607_v25 = vpack.c.b16 %v606_v23, %v605_v22  ;;  %v695_v23 = vld [vmem:[%s1430_s3 + $0x50] sm:$0xff] }
 0x24e   :  { %1000 = vmatmul.msk.bf16.vlgmr.msra.gmra.mxu1 %vm470_vm2, %v663_v24 }
 0x24f   :  { %998 = vmatmul.msk.bf16.vlgmr.msra.gmra.mxu2 %vm470_vm2, %v607_v25  ;;  %v696_v25 = vld [vmem:[%s1430_s3 + $0x58] sm:$0xff]  ;;  %vm829_vm2 = vcmask 523264  }
 0x2ab   :  { %v598_v57 = vpop.f32.mrf.mxu1 }
 0x2b2   :  { %v654_v26 = vpop.f32.mrf.mxu3 }
 0x2b3   :  { %v600_v3 = vpop.f32.mrf.mxu1  ;;  %v655_v28 = vadd.f32 %v654_v26, %v598_v57 }
 0x2ba   :  { %v656_v32 = vpop.f32.mrf.mxu3 }
 0x2bb   :  { %v657_v36 = vadd.f32 %v656_v32, %v600_v3  ;;  %v1046_v32 = vld [vmem:[%s1429_s2 + $0x98] sm:$0xff] }
 0x2cb   :  { %v682_v27 = vpop.f32.mrf.mxu1 }
 0x2d2   :  { %v626_v8 = vpop.f32.mrf.mxu2 }
 0x2d3   :  { %v683_v29 = vadd.f32 %v682_v27, %v626_v8  ;;  %v684_v34 = vpop.f32.mrf.mxu1  ;;  %v697_v27 = vld [vmem:[%s1430_s3 + $0x60] sm:$0xff]  ;;  %v698_v8 = vld [vmem:[%s1430_s3 + $0x68] sm:$0xff] }
 0x2d5   :  { %v687_v30 = vadd.f32 %v683_v29, %v655_v28 }
 0x2d7   :  { %v691_v31 = vadd.f32 %v689_v9, %v687_v30 }
 0x2d9   :  { %v693_v33 = vadd.f32 %v691_v31, %v1170_v4  ;;  %v1091_v4 = vpop.eup %1090  ;;  %v1047_v31 = vld [vmem:[%s1429_s2 + $0xa0] sm:$0xff] }
 0x2da   :  { %v628_v35 = vpop.f32.mrf.mxu2  ;;  %v706_v46 = vmul.f32 32.0, %v1091_v4  ;;  %vm710_vm10 = vweird.f32 %v1091_v4  ;;  %838 = vmatpush.bf16.msrb.mxu3 %v1047_v31 }
 0x2db   :  { %v685_v38 = vadd.f32 %v684_v34, %v628_v35  ;;  %v699_v39 = vsel %vm47_vm0, %v693_v33, 0.0  ;;  %v1053_v34 = vld [vmem:[%s1429_s2 + $0xb0] sm:$0xff]  }
 0x2dc   :  { %700 = vadd.xlane.f32.xlu1 %v699_v39  ;;  %v707_v48 = vsub.f32 1.0, %v706_v46 }
 0x2dd   :  { %v688_v41 = vadd.f32 %v685_v38, %v657_v36  ;;  %v1051_v36 = vunpack.c.l.bf16 %v1053_v34  ;;  %v1052_v38 = vunpack.c.h.bf16 %v1053_v34 }
 0x2de   :  { %v708_v49 = vmul.f32 %v1091_v4, %v707_v48  ;;  %839 = vmatpush.bf16.msrb.mxu3 %v1046_v32 }
 0x2df   :  { %v692_v42 = vadd.f32 %v690_v40, %v688_v41 }
 0x2e0   :  { %v709_v50 = vadd.f32 %v1091_v4, %v708_v49 }
 0x2e1   :  { %v694_v43 = vadd.f32 %v692_v42, %v1175_v5 }
 0x2e2   :  { %v1354_v52 = vsel %vm710_vm10, %v1091_v4, %v709_v50  ;;  %v804_v50 = vld [vmem:[%s1430_s3 + $0x78] sm:$0xff] }
 0x2e3   :  { %v702_v44 = vsel %vm47_vm0, %v694_v43, 0.0 }
 0x2e4   :  { %703 = vadd.xlane.f32.xlu2 %v702_v44 }
 0x34f   :  { %v701_v54 = vpop.xlane.xlu1 %700 }
 0x350   :  { %v712_v55 = vmul.f32 %v1354_v52, %v701_v54 }
 0x352   :  { %v714_v56 = vsub.f32 %v693_v33, %v712_v55  ;;  %v1045_v33 = vld [vmem:[%s1429_s2 + $0x90] sm:$0xff] }
 0x353   :  { %840 = vmatpush.bf16.msrb.mxu3 %v1045_v33 }
 0x354   :  { %v716_v58 = vmul.f32 %v714_v56, %v714_v56 }
 0x356   :  { %v718_v5 = vsel %vm47_vm0, %v716_v58, 0.0 }
 0x357   :  { %v704_v59 = vpop.xlane.xlu2 %703  ;;  %719 = vadd.xlane.f32.xlu0 %v718_v5 }
 0x358   :  { %v713_v60 = vmul.f32 %v1354_v52, %v704_v59 }
 0x35a   :  { %v715_v61 = vsub.f32 %v694_v43, %v713_v60 }
 0x35c   :  { %v717_v62 = vmul.f32 %v715_v61, %v715_v61 }
 0x35e   :  { %v721_v63 = vsel %vm47_vm0, %v717_v62, 0.0 }
 0x35f   :  { %722 = vadd.xlane.f32.xlu1 %v721_v63 }
 0x3ca   :  { %v720_v1 = vpop.xlane.xlu0 %719 }
 0x3cb   :  { %v724_v2 = vmul.f32 %v720_v1, %v1354_v52 }
 0x3cd   :  { %v726_v47 = vadd.f32 1e-05, %v724_v2 }
 0x3cf   :  { %1092 = vrsqrt.f32 %v726_v47  ;;  %vm734_vm12 = vweird.f32 %v726_v47 }
 0x3d2   :  { %v723_v6 = vpop.xlane.xlu1 %722 }
 0x3d3   :  { %v725_v7 = vmul.f32 %v723_v6, %v1354_v52 }
 0x3d5   :  { %v1093_v51 = vpop.eup %1092  ;;  %v727_v10 = vadd.f32 1e-05, %v725_v7 }
 0x3d6   :  { %v729_v11 = vmul.f32 %v1093_v51, %v726_v47  ;;  %vm735_vm11 = vweird.f32 %v1093_v51 }
 0x3d7   :  { %1094 = vrsqrt.f32 %v727_v10  ;;  %vm736_vm13 = vmor %vm734_vm12, %vm735_vm11  ;;  %vm744_vm15 = vweird.f32 %v727_v10 }
 0x3d8   :  { %v730_v12 = vmul.f32 %v1093_v51, %v729_v11 }
 0x3da   :  { %v731_v13 = vmul.f32 0.5, %v730_v12 }
 0x3dc   :  { %v732_v14 = vsub.f32 1.5, %v731_v13 }
 0x3dd   :  { %v1095_v15 = vpop.eup %1094 }
 0x3de   :  { %v733_v16 = vmul.f32 %v1093_v51, %v732_v14  ;;  %v739_v17 = vmul.f32 %v1095_v15, %v727_v10  ;;  %vm745_vm14 = vweird.f32 %v1095_v15 }
 0x3df   :  { %vm746_vm1 = vmor %vm744_vm15, %vm745_vm14 }
 0x3e0   :  { %v740_v18 = vmul.f32 %v1095_v15, %v739_v17  ;;  %v737_v19 = vsel %vm736_vm13, %v1093_v51, %v733_v16 }
 0x3e1   :  { %v748_v22 = vmul.f32 %v737_v19, %v714_v56  ;;  %v849_v19 = vld [vmem:[%s1430_s3 + $0x80] sm:$0xff] }
 0x3e2   :  { %v741_v20 = vmul.f32 0.5, %v740_v18 }
 0x3e3   :  { %v750_v3 = vmul.f32 %v748_v22, %v695_v23  ;;  %v851_v23 = vld [vmem:[%s1430_s3 + $0x90] sm:$0xff] }
 0x3e4   :  { %v742_v21 = vsub.f32 1.5, %v741_v20 }
 0x3e5   :  { %v752_v29 = vadd.f32 %v750_v3, %v697_v27 }
 0x3e6   :  { %v743_v24 = vmul.f32 %v1095_v15, %v742_v21 }
 0x3e8   :  { %v747_v57 = vsel %vm746_vm1, %v1095_v15, %v743_v24 }
 0x3e9   :  { %v749_v26 = vmul.f32 %v747_v57, %v715_v61 }
 0x3eb   :  { %v751_v28 = vmul.f32 %v749_v26, %v696_v25  ;;  %v850_v26 = vld [vmem:[%s1430_s3 + $0x88] sm:$0xff] }
 0x3ed   :  { %v753_v9 = vadd.f32 %v751_v28, %v698_v8  ;;  %v852_v28 = vld [vmem:[%s1430_s3 + $0x98] sm:$0xff] }
 0x3ef   :  { %v768_v30 = vpack.c.bf16 %v753_v9, %v752_v29 }
 0x3f1   :  { %1009 = vmatmul.msk.bf16.vlgmr.msrb.gmra.mxu2 %vm47_vm0, %v768_v30 }
 0x474   :  { %v795_v35 = vpop.f32.mrf.mxu2 }
 0x475   :  { %v796_v39 = vadd.f32 %v1051_v36, %v795_v35 }
 0x477   :  { %v800_v42 = vmax.f32 %v796_v39, 0.0 }
 0x47c   :  { %v797_v40 = vpop.f32.mrf.mxu2 }
 0x47d   :  { %v798_v41 = vadd.f32 %v1052_v38, %v797_v40 }
 0x47f   :  { %v801_v43 = vmax.f32 %v798_v41, 0.0 }
 0x481   :  { %v802_v44 = vpack.c.bf16 %v801_v43, %v800_v42 }
 0x483   :  { %1026 = vmatmul.msk.bf16.vlgmr.msrb.gmra.mxu3 %vm829_vm2, %v802_v44 }
 0x506   :  { %v842_v4 = vpop.f32.mrf.mxu3 }
 0x507   :  { %v843_v46 = vadd.f32 %v842_v4, %v803_v45 }
 0x509   :  { %v847_v48 = vadd.f32 %v843_v46, %v752_v29 }
 0x50b   :  { %v853_v49 = vsel %vm47_vm0, %v847_v48, 0.0 }
 0x50c   :  { %854 = vadd.xlane.f32.xlu2 %v853_v49 }
 0x50e   :  { %v844_v54 = vpop.f32.mrf.mxu3 }
 0x50f   :  { %v845_v55 = vadd.f32 %v844_v54, %v804_v50 }
 0x511   :  { %v848_v56 = vadd.f32 %v845_v55, %v753_v9 }
 0x513   :  { %v856_v58 = vsel %vm47_vm0, %v848_v56, 0.0 }
 0x514   :  { %857 = vadd.xlane.f32.xlu0 %v856_v58 }
 0x57f   :  { %v855_v5 = vpop.xlane.xlu2 %854 }
 0x580   :  { %v859_v59 = vmul.f32 %v855_v5, %v1354_v52 }
 0x582   :  { %v861_v60 = vsub.f32 %v847_v48, %v859_v59 }
 0x584   :  { %v863_v61 = vmul.f32 %v861_v60, %v861_v60 }
 0x586   :  { %v865_v62 = vsel %vm47_vm0, %v863_v61, 0.0 }
 0x587   :  { %v858_v63 = vpop.xlane.xlu0 %857  ;;  %866 = vadd.xlane.f32.xlu1 %v865_v62 }
 0x588   :  { %v860_v0 = vmul.f32 %v858_v63, %v1354_v52 }
 0x58a   :  { %v862_v1 = vsub.f32 %v848_v56, %v860_v0 }
 0x58c   :  { %v864_v2 = vmul.f32 %v862_v1, %v862_v1 }
 0x58e   :  { %v868_v37 = vsel %vm47_vm0, %v864_v2, 0.0 }
 0x58f   :  { %869 = vadd.xlane.f32.xlu2 %v868_v37 }
 0x5fa   :  { %v867_v47 = vpop.xlane.xlu1 %866 }
 0x5fb   :  { %v871_v53 = vmul.f32 %v867_v47, %v1354_v52 }
 0x5fd   :  { %v873_v6 = vadd.f32 1e-05, %v871_v53 }
 0x5ff   :  { %1096 = vrsqrt.f32 %v873_v6  ;;  %vm881_vm4 = vweird.f32 %v873_v6 }
 0x602   :  { %v870_v7 = vpop.xlane.xlu2 %869 }
 0x603   :  { %v872_v51 = vmul.f32 %v870_v7, %v1354_v52 }
 0x605   :  { %v1097_v10 = vpop.eup %1096  ;;  %v874_v11 = vadd.f32 1e-05, %v872_v51 }
 0x606   :  { %v876_v12 = vmul.f32 %v1097_v10, %v873_v6  ;;  %vm882_vm3 = vweird.f32 %v1097_v10 }
 0x607   :  { %1098 = vrsqrt.f32 %v874_v11  ;;  %vm883_vm5 = vmor %vm881_vm4, %vm882_vm3  ;;  %vm891_vm7 = vweird.f32 %v874_v11 }
 0x608   :  { %v877_v13 = vmul.f32 %v1097_v10, %v876_v12 }
 0x60a   :  { %v878_v14 = vmul.f32 0.5, %v877_v13 }
 0x60c   :  { %v879_v15 = vsub.f32 1.5, %v878_v14 }
 0x60d   :  { %v1099_v16 = vpop.eup %1098 }
 0x60e   :  { %v880_v17 = vmul.f32 %v1097_v10, %v879_v15  ;;  %v886_v18 = vmul.f32 %v1099_v16, %v874_v11  ;;  %vm892_vm6 = vweird.f32 %v1099_v16 }
 0x60f   :  { %vm893_vm8 = vmor %vm891_vm7, %vm892_vm6 }
 0x610   :  { %v884_v20 = vsel %vm883_vm5, %v1097_v10, %v880_v17  ;;  %v887_v21 = vmul.f32 %v1099_v16, %v886_v18 }
 0x611   :  { %v895_v52 = vmul.f32 %v884_v20, %v861_v60 }
 0x612   :  { %v888_v22 = vmul.f32 0.5, %v887_v21 }
 0x613   :  { %v897_v24 = vmul.f32 %v895_v52, %v849_v19 }
 0x614   :  { %v889_v25 = vsub.f32 1.5, %v888_v22 }
 0x615   :  { %v899_v57 = vadd.f32 %v897_v24, %v851_v23 }
 0x616   :  { %v890_v3 = vmul.f32 %v1099_v16, %v889_v25 }
 0x617   :  { %901 = vst.msk [vmem:[#allocation2] sm:$0xff] %vm47_vm0, %v899_v57 }
 0x618   :  { %v894_v27 = vsel %vm893_vm8, %v1099_v16, %v890_v3 }
 0x619   :  { %v896_v8 = vmul.f32 %v894_v27, %v862_v1 }
 0x61b   :  { %v898_v29 = vmul.f32 %v896_v8, %v850_v26 }
 0x61d   :  { %v900_v9 = vadd.f32 %v898_v29, %v852_v28 }
 0x61f   :  { %902 = vst.msk [vmem:[#allocation2 + $0x8] sm:$0xff] %vm47_vm0, %v900_v9 }
 0x620   :  { %915 = dma.vmem_to_hbm [thread:$0]  %s908_s23, 256, %s910_s26, [#allocation3], %s1128_s29, %s1128_s29, %s1129_s30  }
 0x621   :  { %1124 = dma.done.wait [#allocation3], 256  }
 0x622   :  { %1125 = vsyncadd [#allocation3], 4294967040 }
 0x623   :  { %920 = vsyncpa [#allocation3], 1 }

</bundles_post_ra>
